<compile_context>
chip_gen: v5e
topology: v5e:2x2
jax: 0.10.0
libtpu: 0.0.40
codegen_flags: <defaults>
</compile_context>

<pallas_src>
import functools

import jax
import jax.numpy as jnp
from jax.experimental import pallas as pl
from jax.experimental.pallas import tpu as pltpu

LANE = 128


# ----------------------------------------------------------------------------
# Helpers
# ----------------------------------------------------------------------------
def _round_up(x, m):
    return ((x + m - 1) // m) * m


def _pad2d(a, rows, cols):
    return jnp.pad(a, ((0, rows - a.shape[0]), (0, cols - a.shape[1])))


def _pick_tile(n_p, cap):
    """Largest tile from {2048,1024,512,256,128} that divides n_p and is <= cap."""
    for cand in (2048, 1024, 512, 256, 128):
        if cand <= cap and n_p % cand == 0:
            return cand
    return LANE  # n_p is always a multiple of 128


def _vmem_limit(tm, tk, f_in, f, compute_dtype, apply_fc):
    """Per-call VMEM footprint (double-buffered streams) + margin, clamped for v7x."""
    cb = jnp.dtype(compute_dtype).itemsize
    need = 2 * tm * tk * cb            # A tile x2 (the dominant HBM stream)
    need += 2 * tk * f_in * cb         # X k-tile x2
    need += 2 * f_in * f * cb          # resident W
    need += 2 * f * 4                  # resident bias (f32)
    need += tm * f * 4                 # f32 accumulator scratch
    need += 2 * tm * f * 4             # output tile x2 (<= f32)
    if apply_fc:
        need += 2 * f * f * 4 + 2 * f * 4   # resident Wfc (f32) + bfc
    # Raise the v5e(16 MiB)/v6e(32 MiB) defaults when needed; never exceed v7x 64 MiB/TC.
    return int(min(56 * 1024 * 1024, max(32 * 1024 * 1024, need + 4 * 1024 * 1024)))


# ----------------------------------------------------------------------------
# Fused GCN-layer kernel:  out[i] = finalize( sum_k A[i,k] @ (X[k] @ W) )
# ----------------------------------------------------------------------------
def _make_gcn_layer_kernel(apply_relu: bool, apply_fc: bool):
    def kernel(*refs):
        if apply_fc:
            a_ref, x_ref, w_ref, b_ref, wfc_ref, bfc_ref, out_ref, acc_ref = refs
        else:
            a_ref, x_ref, w_ref, b_ref, out_ref, acc_ref = refs

        k = pl.program_id(1)

        @pl.when(k == 0)
        def _():
            acc_ref[...] = jnp.zeros_like(acc_ref)

        # Fused feature transform: M[k_tile] = X[k_tile] @ W (W resident in VMEM).
        # Recomputed per row tile i — extra MXU work ~ f_in/tm, free on a mem-bound kernel,
        # and it removes the M HBM write + re-read entirely.
        m_tile = jnp.dot(
            x_ref[...], w_ref[...], preferred_element_type=jnp.float32
        ).astype(a_ref.dtype)

        acc_ref[...] += jnp.dot(
            a_ref[...], m_tile, preferred_element_type=jnp.float32
        )

        @pl.when(k == pl.num_programs(1) - 1)
        def _():
            h = acc_ref[...] + b_ref[...]          # f32 bias add
            if apply_relu:
                h = jnp.maximum(h, 0.0)
            if apply_fc:
                # Tiny (tm, f) @ (f, f) matmul: keep it in f32 for accuracy.
                h = jnp.dot(
                    h, wfc_ref[...], preferred_element_type=jnp.float32
                ) + bfc_ref[...]
            out_ref[...] = h.astype(out_ref.dtype)

    return kernel


def _gcn_layer(a_p, x_p, w, bias, *, relu, wfc=None, bfc=None,
               tm, tk, out_dtype):
    n_p = a_p.shape[0]
    f_in = x_p.shape[1]
    f = w.shape[1]
    apply_fc = wfc is not None

    in_specs = [
        pl.BlockSpec((tm, tk), lambda i, k: (i, k)),       # A_hat tile (the big stream)
        pl.BlockSpec((tk, f_in), lambda i, k: (k, 0)),     # X k-tile
        pl.BlockSpec((f_in, f), lambda i, k: (0, 0)),      # W (resident)
        pl.BlockSpec((1, f), lambda i, k: (0, 0)),         # bias (resident, f32)
    ]
    args = [a_p, x_p, w, bias]
    if apply_fc:
        in_specs += [
            pl.BlockSpec((f, f), lambda i, k: (0, 0)),     # Wfc (resident, f32)
            pl.BlockSpec((1, f), lambda i, k: (0, 0)),     # bfc (resident, f32)
        ]
        args += [wfc, bfc]

    a_bytes = jnp.dtype(a_p.dtype).itemsize
    cost = pl.CostEstimate(
        flops=int(2 * n_p * n_p * f + 2 * (n_p * n_p // tm) * f_in * f),
        transcendentals=0,
        bytes_accessed=int(
            n_p * n_p * a_bytes                          # A read once
            + (n_p // tm) * n_p * f_in * a_bytes         # X re-streamed per row tile
            + n_p * f * jnp.dtype(out_dtype).itemsize    # output write
        ),
    )

    return pl.pallas_call(
        _make_gcn_layer_kernel(relu, apply_fc),
        out_shape=jax.ShapeDtypeStruct((n_p, f), out_dtype),
        grid_spec=pltpu.PrefetchScalarGridSpec(
            num_scalar_prefetch=0,
            grid=(n_p // tm, n_p // tk),
            in_specs=in_specs,
            out_specs=pl.BlockSpec((tm, f), lambda i, k: (i, 0)),
            scratch_shapes=[pltpu.VMEM((tm, f), jnp.float32)],
        ),
        compiler_params=pltpu.CompilerParams(
            dimension_semantics=("parallel", "arbitrary"),
            vmem_limit_bytes=_vmem_limit(tm, tk, f_in, f, a_p.dtype, apply_fc),
        ),
        cost_estimate=cost,
    )(*args)


# ----------------------------------------------------------------------------
# Forward pass
# ----------------------------------------------------------------------------
@functools.partial(jax.jit, static_argnames=("use_bf16",))
def gcn_forward(a_p, x, w1, b1, w2, b2, wfc, bfc, *, use_bf16=True):
    """a_p: pre-padded (and ideally pre-cast) normalized adjacency, shape (n_p, n_p)."""
    n, f_in = x.shape
    hidden = w1.shape[1]
    out_dim = wfc.shape[1]
    n_p = a_p.shape[0]

    f_in_p = _round_up(f_in, LANE)
    h_p = _round_up(hidden, LANE)
    o_p = _round_up(out_dim, LANE)

    cdt = jnp.bfloat16 if use_bf16 else jnp.float32   # MXU-input dtype (f32 accumulate)
    if a_p.dtype != cdt:
        a_p = a_p.astype(cdt)   # no-op when the caller already hoisted the cast

    # Cheap O(N*f) pads/casts stay inside the jit; the O(N^2) A pad/cast is hoisted.
    x_p = _pad2d(x, n_p, f_in_p).astype(cdt)
    w1_p = _pad2d(w1, f_in_p, h_p).astype(cdt)
    w2_p = _pad2d(w2, h_p, o_p).astype(cdt)
    wfc_p = _pad2d(wfc, o_p, o_p).astype(jnp.float32)     # f32 epilogue matmul
    b1_p = _pad2d(b1, 1, h_p).astype(jnp.float32)
    b2_p = _pad2d(b2, 1, o_p).astype(jnp.float32)
    bfc_p = _pad2d(bfc, 1, o_p).astype(jnp.float32)

    # Tile selection: big tiles (mem-bound kernel), tm capped at n_p/2 so the parallel row
    # axis still splits across v7x's two TensorCores; tiles are exact divisors of n_p.
    tm_cap = n_p if n_p <= LANE else min(1024, max(LANE, n_p // 2))
    tm = _pick_tile(n_p, tm_cap)
    tk = _pick_tile(n_p, min(2048, n_p))

    # conv1: relu(A_hat @ (X @ W1) + b1)   — transform fused into the k-loop
    h1 = _gcn_layer(a_p, x_p, w1_p, b1_p, relu=True,
                    tm=tm, tk=tk, out_dtype=cdt)

    # conv2 + fc fused: ((A_hat @ (h1 @ W2)) + b2) @ Wfc + bfc
    out_p = _gcn_layer(a_p, h1, w2_p, b2_p, relu=False, wfc=wfc_p, bfc=bfc_p,
                       tm=tm, tk=tk, out_dtype=jnp.float32)
    return out_p[:n, :out_dim]


def build_normalized_adjacency(edge_index, num_nodes):
    """Dense D^{-1/2} (A + I) D^{-1/2}, edge weight 1 (PyG GCNConv default)."""
    src, dst = edge_index[0], edge_index[1]
    a = jnp.zeros((num_nodes, num_nodes), dtype=jnp.float32)
    # Message flows src -> dst: row = dst (aggregating node), col = src (neighbor).
    a = a.at[dst, src].add(1.0)
    a = a + jnp.eye(num_nodes, dtype=jnp.float32)          # self-loops
    deg = a.sum(axis=1)
    d_inv_sqrt = jnp.where(deg > 0, 1.0 / jnp.sqrt(deg), 0.0)
    return d_inv_sqrt[:, None] * a * d_inv_sqrt[None, :]


def pad_adjacency(a_hat, dtype=jnp.bfloat16):
    """One-time pad (to a multiple of 128) + cast of the N^2 adjacency stream.

    Build this once and reuse it across forward calls: it is the dominant HBM stream,
    so re-padding / re-casting it per call costs ~1.5x the bytes the kernels read.
    """
    n = a_hat.shape[0]
    n_p = _round_up(n, LANE)
    return _pad2d(a_hat, n_p, n_p).astype(dtype)


# ----------------------------------------------------------------------------
# Demo / self-check
# ----------------------------------------------------------------------------
if __name__ == "__main__":
    key = jax.random.PRNGKey(0)
    k_x, k_w1, k_w2, k_wfc, k_bfc, k_es, k_eo = jax.random.split(key, 7)

    num_nodes = 16
    input_dim = 8
    hidden_dim = 32
    output_dim = 16

    # Node features.
    x = jax.random.normal(k_x, (num_nodes, input_dim), dtype=jnp.float32)

    # Deterministic edge_index (2, E): bidirectional ring plus random non-self-loop extras.
    ring_src = jnp.arange(num_nodes)
    ring_dst = (ring_src + 1) % num_nodes
    extra_src = jax.random.randint(k_es, (8,), 0, num_nodes)
    extra_off = jax.random.randint(k_eo, (8,), 2, num_nodes - 1)
    extra_dst = (extra_src + extra_off) % num_nodes
    edge_index = jnp.concatenate(
        [jnp.stack([ring_src, ring_dst]),
         jnp.stack([ring_dst, ring_src]),
         jnp.stack([extra_src, extra_dst])], axis=1)

    a_hat = build_normalized_adjacency(edge_index, num_nodes)
    a_p_f32 = pad_adjacency(a_hat, jnp.float32)    # exact-precision check path
    a_p_bf16 = pad_adjacency(a_hat, jnp.bfloat16)  # deployed path (pad+cast hoisted)

    # Parameters (GCNConv: glorot weight + zero bias; Linear: uniform bias).
    def glorot(k, shape):
        limit = jnp.sqrt(6.0 / (shape[0] + shape[1]))
        return jax.random.uniform(k, shape, jnp.float32, -limit, limit)

    w1 = glorot(k_w1, (input_dim, hidden_dim))
    b1 = jnp.zeros((1, hidden_dim), dtype=jnp.float32)
    w2 = glorot(k_w2, (hidden_dim, output_dim))
    b2 = jnp.zeros((1, output_dim), dtype=jnp.float32)
    wfc = glorot(k_wfc, (output_dim, output_dim))
    bfc = jax.random.uniform(
        k_bfc, (1, output_dim), jnp.float32,
        -1.0 / jnp.sqrt(output_dim), 1.0 / jnp.sqrt(output_dim))

    # Pure-JAX f32 reference of the module's math.
    h_ref = jnp.maximum(a_hat @ (x @ w1) + b1, 0.0)
    h_ref = a_hat @ (h_ref @ w2) + b2
    ref = h_ref @ wfc + bfc

    # Exact-precision path (f32 MXU inputs): tight structural check.
    out_f32 = gcn_forward(a_p_f32, x, w1, b1, w2, b2, wfc, bfc, use_bf16=False)
    jax.block_until_ready(out_f32)
    assert out_f32.shape == (num_nodes, output_dim)
    assert jnp.allclose(out_f32, ref, atol=1e-4, rtol=1e-4)

    # Fast path (bf16 MXU inputs, f32 accumulation) — default deployment path.
    out = gcn_forward(a_p_bf16, x, w1, b1, w2, b2, wfc, bfc, use_bf16=True)
    jax.block_until_ready(out)
    assert out.shape == (num_nodes, output_dim)
    assert jnp.allclose(out, ref, atol=5e-2, rtol=5e-2)

    print("KERNEL_OK")
</pallas_src>

<mosaic_0001>
module attributes {stable_mosaic.version = 11 : i64} {
  func.func @kernel(%arg0: i32, %arg1: i32, %arg2: memref<128x128xf32, #tpu.memory_space<vmem>>, %arg3: memref<128x128xf32, #tpu.memory_space<vmem>>, %arg4: memref<128x128xf32, #tpu.memory_space<vmem>>, %arg5: memref<1x128xf32, #tpu.memory_space<vmem>>, %arg6: memref<128x128xf32, #tpu.memory_space<vmem>>, %arg7: memref<128x128xf32, #tpu.memory_space<vmem>>) attributes {dimension_semantics = [#tpu.dimension_semantics<parallel>, #tpu.dimension_semantics<arbitrary>], iteration_bounds = array<i64: 1, 1>, scalar_prefetch = 0 : i64, scratch_operands = 1 : i64, tpu.core_type = #tpu.core_type<tc>, window_params = [{transform_indices = @transform_0, window_bounds = array<i64: 128, 128>}, {transform_indices = @transform_1, window_bounds = array<i64: 128, 128>}, {pipeline_mode = #tpu.pipeline_mode<synchronous>, transform_indices = @transform_2, window_bounds = array<i64: 128, 128>}, {pipeline_mode = #tpu.pipeline_mode<synchronous>, transform_indices = @transform_3, window_bounds = array<i64: 1, 128>}, {transform_indices = @transform_4, window_bounds = array<i64: 128, 128>}]} {
    %c0_i32 = arith.constant 0 : i32
    %0 = arith.cmpi eq, %arg1, %c0_i32 : i32
    %1 = arith.extui %0 : i1 to i32
    %c0_i32_0 = arith.constant 0 : i32
    %2 = arith.cmpi ne, %1, %c0_i32_0 : i32
    scf.if %2 {
      %cst_13 = arith.constant 0.000000e+00 : f32
      %14 = vector.broadcast %cst_13 : f32 to vector<128x128xf32>
      %c0_14 = arith.constant 0 : index
      %c0_15 = arith.constant 0 : index
      %15 = vector.load %arg7[%c0_14, %c0_15] : memref<128x128xf32, #tpu.memory_space<vmem>>, vector<128x128xf32>
      tpu.vector_store %arg7[%c0_14, %c0_15], %14 {strides = array<i32>} : memref<128x128xf32, #tpu.memory_space<vmem>>, vector<128x128xf32>,
    } else {
    }
    %c0 = arith.constant 0 : index
    %c0_1 = arith.constant 0 : index
    %3 = vector.load %arg3[%c0, %c0_1] : memref<128x128xf32, #tpu.memory_space<vmem>>, vector<128x128xf32>
    %c0_2 = arith.constant 0 : index
    %c0_3 = arith.constant 0 : index
    %4 = vector.load %arg4[%c0_2, %c0_3] : memref<128x128xf32, #tpu.memory_space<vmem>>, vector<128x128xf32>
    %cst = arith.constant dense<0.000000e+00> : vector<128x128xf32>
    %5 = tpu.matmul %3, %4, %cst {dimension_numbers = #tpu.dot_dimension_numbers<[1], [0], [0], [1], [0, 0, 1, 1], [], []>} : vector<128x128xf32>, vector<128x128xf32>, vector<128x128xf32> -> vector<128x128xf32>
    %c0_4 = arith.constant 0 : index
    %c0_5 = arith.constant 0 : index
    %6 = vector.load %arg7[%c0_4, %c0_5] : memref<128x128xf32, #tpu.memory_space<vmem>>, vector<128x128xf32>
    %c0_6 = arith.constant 0 : index
    %c0_7 = arith.constant 0 : index
    %7 = vector.load %arg2[%c0_6, %c0_7] : memref<128x128xf32, #tpu.memory_space<vmem>>, vector<128x128xf32>
    %cst_8 = arith.constant dense<0.000000e+00> : vector<128x128xf32>
    %8 = tpu.matmul %7, %5, %cst_8 {dimension_numbers = #tpu.dot_dimension_numbers<[1], [0], [0], [1], [0, 0, 1, 1], [], []>} : vector<128x128xf32>, vector<128x128xf32>, vector<128x128xf32> -> vector<128x128xf32>
    %9 = arith.addf %6, %8 : vector<128x128xf32>
    %c0_9 = arith.constant 0 : index
    %c0_10 = arith.constant 0 : index
    %10 = vector.load %arg7[%c0_9, %c0_10] : memref<128x128xf32, #tpu.memory_space<vmem>>, vector<128x128xf32>
    tpu.vector_store %arg7[%c0_9, %c0_10], %9 {strides = array<i32>} : memref<128x128xf32, #tpu.memory_space<vmem>>, vector<128x128xf32>,
    %c0_i32_11 = arith.constant 0 : i32
    %11 = arith.cmpi eq, %arg1, %c0_i32_11 : i32
    %12 = arith.extui %11 : i1 to i32
    %c0_i32_12 = arith.constant 0 : i32
    %13 = arith.cmpi ne, %12, %c0_i32_12 : i32
    scf.if %13 {
      %c0_13 = arith.constant 0 : index
      %c0_14 = arith.constant 0 : index
      %14 = vector.load %arg7[%c0_13, %c0_14] : memref<128x128xf32, #tpu.memory_space<vmem>>, vector<128x128xf32>
      %c0_15 = arith.constant 0 : index
      %c0_16 = arith.constant 0 : index
      %15 = vector.load %arg5[%c0_15, %c0_16] : memref<1x128xf32, #tpu.memory_space<vmem>>, vector<1x128xf32>
      %16 = vector.broadcast %15 : vector<1x128xf32> to vector<128x128xf32>
      %17 = arith.addf %14, %16 : vector<128x128xf32>
      %cst_17 = arith.constant 0.000000e+00 : f32
      %18 = vector.broadcast %cst_17 : f32 to vector<128x128xf32>
      %19 = arith.maximumf %17, %18 : vector<128x128xf32>
      %c0_18 = arith.constant 0 : index
      %c0_19 = arith.constant 0 : index
      %20 = vector.load %arg6[%c0_18, %c0_19] : memref<128x128xf32, #tpu.memory_space<vmem>>, vector<128x128xf32>
      tpu.vector_store %arg6[%c0_18, %c0_19], %19 {strides = array<i32>} : memref<128x128xf32, #tpu.memory_space<vmem>>, vector<128x128xf32>,
    } else {
    }
    return
  }
  func.func @transform_0(%arg0: i32, %arg1: i32) -> (i32, i32) {
    %c0_i32 = arith.constant 0 : i32
    return %arg0, %arg1 : i32, i32
  }
  func.func @transform_1(%arg0: i32, %arg1: i32) -> (i32, i32) {
    %c0_i32 = arith.constant 0 : i32
    %c0_i32_0 = arith.constant 0 : i32
    return %arg1, %c0_i32 : i32, i32
  }
  func.func @transform_2(%arg0: i32, %arg1: i32) -> (i32, i32) {
    %c0_i32 = arith.constant 0 : i32
    %c0_i32_0 = arith.constant 0 : i32
    %c0_i32_1 = arith.constant 0 : i32
    return %c0_i32, %c0_i32_0 : i32, i32
  }
  func.func @transform_3(%arg0: i32, %arg1: i32) -> (i32, i32) {
    %c0_i32 = arith.constant 0 : i32
    %c0_i32_0 = arith.constant 0 : i32
    %c0_i32_1 = arith.constant 0 : i32
    return %c0_i32, %c0_i32_0 : i32, i32
  }
  func.func @transform_4(%arg0: i32, %arg1: i32) -> (i32, i32) {
    %c0_i32 = arith.constant 0 : i32
    %c0_i32_0 = arith.constant 0 : i32
    return %arg0, %c0_i32 : i32, i32
  }
}

module attributes {stable_mosaic.version = 11 : i64} {
  func.func @kernel(%arg0: i32, %arg1: i32, %arg2: memref<128x128xf32, #tpu.memory_space<vmem>>, %arg3: memref<128x128xf32, #tpu.memory_space<vmem>>, %arg4: memref<128x128xf32, #tpu.memory_space<vmem>>, %arg5: memref<1x128xf32, #tpu.memory_space<vmem>>, %arg6: memref<128x128xf32, #tpu.memory_space<vmem>>, %arg7: memref<1x128xf32, #tpu.memory_space<vmem>>, %arg8: memref<128x128xf32, #tpu.memory_space<vmem>>, %arg9: memref<128x128xf32, #tpu.memory_space<vmem>>) attributes {dimension_semantics = [#tpu.dimension_semantics<parallel>, #tpu.dimension_semantics<arbitrary>], iteration_bounds = array<i64: 1, 1>, scalar_prefetch = 0 : i64, scratch_operands = 1 : i64, tpu.core_type = #tpu.core_type<tc>, window_params = [{transform_indices = @transform_0, window_bounds = array<i64: 128, 128>}, {transform_indices = @transform_1, window_bounds = array<i64: 128, 128>}, {pipeline_mode = #tpu.pipeline_mode<synchronous>, transform_indices = @transform_2, window_bounds = array<i64: 128, 128>}, {pipeline_mode = #tpu.pipeline_mode<synchronous>, transform_indices = @transform_3, window_bounds = array<i64: 1, 128>}, {pipeline_mode = #tpu.pipeline_mode<synchronous>, transform_indices = @transform_4, window_bounds = array<i64: 128, 128>}, {pipeline_mode = #tpu.pipeline_mode<synchronous>, transform_indices = @transform_5, window_bounds = array<i64: 1, 128>}, {transform_indices = @transform_6, window_bounds = array<i64: 128, 128>}]} {
    %c0_i32 = arith.constant 0 : i32
    %0 = arith.cmpi eq, %arg1, %c0_i32 : i32
    %1 = arith.extui %0 : i1 to i32
    %c0_i32_0 = arith.constant 0 : i32
    %2 = arith.cmpi ne, %1, %c0_i32_0 : i32
    scf.if %2 {
      %cst_13 = arith.constant 0.000000e+00 : f32
      %14 = vector.broadcast %cst_13 : f32 to vector<128x128xf32>
      %c0_14 = arith.constant 0 : index
      %c0_15 = arith.constant 0 : index
      %15 = vector.load %arg9[%c0_14, %c0_15] : memref<128x128xf32, #tpu.memory_space<vmem>>, vector<128x128xf32>
      tpu.vector_store %arg9[%c0_14, %c0_15], %14 {strides = array<i32>} : memref<128x128xf32, #tpu.memory_space<vmem>>, vector<128x128xf32>,
    } else {
    }
    %c0 = arith.constant 0 : index
    %c0_1 = arith.constant 0 : index
    %3 = vector.load %arg3[%c0, %c0_1] : memref<128x128xf32, #tpu.memory_space<vmem>>, vector<128x128xf32>
    %c0_2 = arith.constant 0 : index
    %c0_3 = arith.constant 0 : index
    %4 = vector.load %arg4[%c0_2, %c0_3] : memref<128x128xf32, #tpu.memory_space<vmem>>, vector<128x128xf32>
    %cst = arith.constant dense<0.000000e+00> : vector<128x128xf32>
    %5 = tpu.matmul %3, %4, %cst {dimension_numbers = #tpu.dot_dimension_numbers<[1], [0], [0], [1], [0, 0, 1, 1], [], []>} : vector<128x128xf32>, vector<128x128xf32>, vector<128x128xf32> -> vector<128x128xf32>
    %c0_4 = arith.constant 0 : index
    %c0_5 = arith.constant 0 : index
    %6 = vector.load %arg9[%c0_4, %c0_5] : memref<128x128xf32, #tpu.memory_space<vmem>>, vector<128x128xf32>
    %c0_6 = arith.constant 0 : index
    %c0_7 = arith.constant 0 : index
    %7 = vector.load %arg2[%c0_6, %c0_7] : memref<128x128xf32, #tpu.memory_space<vmem>>, vector<128x128xf32>
    %cst_8 = arith.constant dense<0.000000e+00> : vector<128x128xf32>
    %8 = tpu.matmul %7, %5, %cst_8 {dimension_numbers = #tpu.dot_dimension_numbers<[1], [0], [0], [1], [0, 0, 1, 1], [], []>} : vector<128x128xf32>, vector<128x128xf32>, vector<128x128xf32> -> vector<128x128xf32>
    %9 = arith.addf %6, %8 : vector<128x128xf32>
    %c0_9 = arith.constant 0 : index
    %c0_10 = arith.constant 0 : index
    %10 = vector.load %arg9[%c0_9, %c0_10] : memref<128x128xf32, #tpu.memory_space<vmem>>, vector<128x128xf32>
    tpu.vector_store %arg9[%c0_9, %c0_10], %9 {strides = array<i32>} : memref<128x128xf32, #tpu.memory_space<vmem>>, vector<128x128xf32>,
    %c0_i32_11 = arith.constant 0 : i32
    %11 = arith.cmpi eq, %arg1, %c0_i32_11 : i32
    %12 = arith.extui %11 : i1 to i32
    %c0_i32_12 = arith.constant 0 : i32
    %13 = arith.cmpi ne, %12, %c0_i32_12 : i32
    scf.if %13 {
      %c0_13 = arith.constant 0 : index
      %c0_14 = arith.constant 0 : index
      %14 = vector.load %arg9[%c0_13, %c0_14] : memref<128x128xf32, #tpu.memory_space<vmem>>, vector<128x128xf32>
      %c0_15 = arith.constant 0 : index
      %c0_16 = arith.constant 0 : index
      %15 = vector.load %arg5[%c0_15, %c0_16] : memref<1x128xf32, #tpu.memory_space<vmem>>, vector<1x128xf32>
      %16 = vector.broadcast %15 : vector<1x128xf32> to vector<128x128xf32>
      %17 = arith.addf %14, %16 : vector<128x128xf32>
      %c0_17 = arith.constant 0 : index
      %c0_18 = arith.constant 0 : index
      %18 = vector.load %arg6[%c0_17, %c0_18] : memref<128x128xf32, #tpu.memory_space<vmem>>, vector<128x128xf32>
      %cst_19 = arith.constant dense<0.000000e+00> : vector<128x128xf32>
      %19 = tpu.matmul %17, %18, %cst_19 {dimension_numbers = #tpu.dot_dimension_numbers<[1], [0], [0], [1], [0, 0, 1, 1], [], []>} : vector<128x128xf32>, vector<128x128xf32>, vector<128x128xf32> -> vector<128x128xf32>
      %c0_20 = arith.constant 0 : index
      %c0_21 = arith.constant 0 : index
      %20 = vector.load %arg7[%c0_20, %c0_21] : memref<1x128xf32, #tpu.memory_space<vmem>>, vector<1x128xf32>
      %21 = vector.broadcast %20 : vector<1x128xf32> to vector<128x128xf32>
      %22 = arith.addf %19, %21 : vector<128x128xf32>
      %c0_22 = arith.constant 0 : index
      %c0_23 = arith.constant 0 : index
      %23 = vector.load %arg8[%c0_22, %c0_23] : memref<128x128xf32, #tpu.memory_space<vmem>>, vector<128x128xf32>
      tpu.vector_store %arg8[%c0_22, %c0_23], %22 {strides = array<i32>} : memref<128x128xf32, #tpu.memory_space<vmem>>, vector<128x128xf32>,
    } else {
    }
    return
  }
  func.func @transform_0(%arg0: i32, %arg1: i32) -> (i32, i32) {
    %c0_i32 = arith.constant 0 : i32
    return %arg0, %arg1 : i32, i32
  }
  func.func @transform_1(%arg0: i32, %arg1: i32) -> (i32, i32) {
    %c0_i32 = arith.constant 0 : i32
    %c0_i32_0 = arith.constant 0 : i32
    return %arg1, %c0_i32 : i32, i32
  }
  func.func @transform_2(%arg0: i32, %arg1: i32) -> (i32, i32) {
    %c0_i32 = arith.constant 0 : i32
    %c0_i32_0 = arith.constant 0 : i32
    %c0_i32_1 = arith.constant 0 : i32
    return %c0_i32, %c0_i32_0 : i32, i32
  }
  func.func @transform_3(%arg0: i32, %arg1: i32) -> (i32, i32) {
    %c0_i32 = arith.constant 0 : i32
    %c0_i32_0 = arith.constant 0 : i32
    %c0_i32_1 = arith.constant 0 : i32
    return %c0_i32, %c0_i32_0 : i32, i32
  }
  func.func @transform_4(%arg0: i32, %arg1: i32) -> (i32, i32) {
    %c0_i32 = arith.constant 0 : i32
    %c0_i32_0 = arith.constant 0 : i32
    %c0_i32_1 = arith.constant 0 : i32
    return %c0_i32, %c0_i32_0 : i32, i32
  }
  func.func @transform_5(%arg0: i32, %arg1: i32) -> (i32, i32) {
    %c0_i32 = arith.constant 0 : i32
    %c0_i32_0 = arith.constant 0 : i32
    %c0_i32_1 = arith.constant 0 : i32
    return %c0_i32, %c0_i32_0 : i32, i32
  }
  func.func @transform_6(%arg0: i32, %arg1: i32) -> (i32, i32) {
    %c0_i32 = arith.constant 0 : i32
    %c0_i32_0 = arith.constant 0 : i32
    return %arg0, %c0_i32 : i32, i32
  }
}

</mosaic_0001>

<bundles_post_ra>
// kernel: gcn_forward.3
= control target key start
LH: loop header
LB: loop body
LE: loop exit
PB: predicated region body
PF: predicated region fallthrough
CT: control target
= control target key end

     0   :  { %s744_s2 = inlined_call_operand.vmem [shape: f32[128,128], index: 2, kind: input, shape index: {}]   ;;  %s745_s1 = inlined_call_operand.vmem [shape: f32[128,128], index: 1, kind: input, shape index: {}]   ;;  %s746_s3 = inlined_call_operand.vmem [shape: f32[1,128], index: 3, kind: input, shape index: {}]   ;;  %s747_s0 = inlined_call_operand.vmem [shape: f32[128,128], index: 0, kind: input, shape index: {}]   ;;  %s748_s4 = inlined_call_operand.vmem [shape: f32[128,128], index: 4, kind: input, shape index: {}]   ;;  %s749_s5 = inlined_call_operand.vmem [shape: f32[1,128], index: 5, kind: input, shape index: {}]   ;;  %s750_s6 = inlined_call_operand.vmem [shape: f32[128,128], index: 6, kind: output, shape index: {}]  }
   0x1   :  { %v74_v0 = vld [vmem:[%s744_s2 + $0x78] sm:$0xff]  ;;  %v73_v1 = vld [vmem:[%s744_s2 + $0x70] sm:$0xff]  ;;  %v72_v2 = vld [vmem:[%s744_s2 + $0x68] sm:$0xff] }
   0x2   :  { %75 = vmatpush.msra.mxu0 %v74_v0  ;;  %413 = vmatpush.msra.mxu3 %v74_v0  ;;  %v71_v3 = vld [vmem:[%s744_s2 + $0x60] sm:$0xff]  ;;  %v70_v4 = vld [vmem:[%s744_s2 + $0x58] sm:$0xff]  ;;  %v69_v5 = vld [vmem:[%s744_s2 + $0x50] sm:$0xff] }
   0x3   :  { %v68_v6 = vld [vmem:[%s744_s2 + $0x48] sm:$0xff]  ;;  %v67_v7 = vld [vmem:[%s744_s2 + $0x40] sm:$0xff]  ;;  %v66_v8 = vld [vmem:[%s744_s2 + $0x38] sm:$0xff] }
   0x4   :  { %76 = vmatpush.msra.mxu0 %v73_v1  ;;  %414 = vmatpush.msra.mxu3 %v73_v1  ;;  %v65_v9 = vld [vmem:[%s744_s2 + $0x30] sm:$0xff]  ;;  %v64_v10 = vld [vmem:[%s744_s2 + $0x28] sm:$0xff]  ;;  %v63_v11 = vld [vmem:[%s744_s2 + $0x20] sm:$0xff] }
   0x5   :  { %v62_v12 = vld [vmem:[%s744_s2 + $0x18] sm:$0xff]  ;;  %v61_v13 = vld [vmem:[%s744_s2 + $0x10] sm:$0xff]  ;;  %v60_v14 = vld [vmem:[%s744_s2 + $0x8] sm:$0xff] }
   0x6   :  { %77 = vmatpush.msra.mxu0 %v72_v2  ;;  %415 = vmatpush.msra.mxu3 %v72_v2  ;;  %v59_v15 = vld [vmem:[%s744_s2] sm:$0xff]  ;;  %v44_v18 = vld [vmem:[%s745_s1 + $0x8] sm:$0xff]  ;;  %v45_v20 = vld [vmem:[%s745_s1 + $0x10] sm:$0xff] }
   0x7   :  { %v43_v16 = vld [vmem:[%s745_s1] sm:$0xff]  ;;  %v56_v19 = vld [vmem:[%s745_s1 + $0x68] sm:$0xff]  ;;  %v57_v21 = vld [vmem:[%s745_s1 + $0x70] sm:$0xff] }
   0x8   :  { %78 = vmatpush.msra.mxu0 %v71_v3  ;;  %416 = vmatpush.msra.mxu3 %v71_v3  ;;  %v55_v17 = vld [vmem:[%s745_s1 + $0x60] sm:$0xff]  ;;  %v46_v22 = vld [vmem:[%s745_s1 + $0x18] sm:$0xff]  ;;  %v48_v25 = vld [vmem:[%s745_s1 + $0x28] sm:$0xff] }
   0x9   :  { %v58_v23 = vld [vmem:[%s745_s1 + $0x78] sm:$0xff]  ;;  %v47_v24 = vld [vmem:[%s745_s1 + $0x20] sm:$0xff]  ;;  %v49_v26 = vld [vmem:[%s745_s1 + $0x30] sm:$0xff] }
   0xa   :  { %79 = vmatpush.msra.mxu0 %v70_v4  ;;  %417 = vmatpush.msra.mxu3 %v70_v4  ;;  %v50_v27 = vld [vmem:[%s745_s1 + $0x38] sm:$0xff]  ;;  %v51_v28 = vld [vmem:[%s745_s1 + $0x40] sm:$0xff]  ;;  %v52_v29 = vld [vmem:[%s745_s1 + $0x48] sm:$0xff] }
   0xb   :  { %v53_v30 = vld [vmem:[%s745_s1 + $0x50] sm:$0xff]  ;;  %v54_v31 = vld [vmem:[%s745_s1 + $0x58] sm:$0xff]  ;;  %v156_v48 = vld [vmem:[%s747_s0] sm:$0xff] }
   0xc   :  { %80 = vmatpush.msra.mxu0 %v69_v5  ;;  %418 = vmatpush.msra.mxu3 %v69_v5  ;;  %v157_v49 = vld [vmem:[%s747_s0 + $0x8] sm:$0xff]  ;;  %v158_v50 = vld [vmem:[%s747_s0 + $0x10] sm:$0xff]  ;;  %v159_v51 = vld [vmem:[%s747_s0 + $0x18] sm:$0xff] }
   0xd   :  { %v168_v52 = vld [vmem:[%s747_s0 + $0x60] sm:$0xff]  ;;  %v169_v54 = vld [vmem:[%s747_s0 + $0x68] sm:$0xff]  ;;  %v170_v56 = vld [vmem:[%s747_s0 + $0x70] sm:$0xff] }
   0xe   :  { %81 = vmatpush.msra.mxu0 %v68_v6  ;;  %419 = vmatpush.msra.mxu3 %v68_v6  ;;  %v160_v53 = vld [vmem:[%s747_s0 + $0x20] sm:$0xff]  ;;  %v161_v55 = vld [vmem:[%s747_s0 + $0x28] sm:$0xff]  ;;  %v162_v57 = vld [vmem:[%s747_s0 + $0x30] sm:$0xff] }
   0xf   :  { %v171_v58 = vld [vmem:[%s747_s0 + $0x78] sm:$0xff]  ;;  %v322_v61 = vld [vmem:[%s748_s4 + $0x70] sm:$0xff]  ;;  %v321_v62 = vld [vmem:[%s748_s4 + $0x68] sm:$0xff] }
  0x10   :  { %82 = vmatpush.msra.mxu0 %v67_v7  ;;  %420 = vmatpush.msra.mxu3 %v67_v7  ;;  %v163_v59 = vld [vmem:[%s747_s0 + $0x38] sm:$0xff]  ;;  %v320_v63 = vld [vmem:[%s748_s4 + $0x60] sm:$0xff]  ;;  %v318_v2 = vld [vmem:[%s748_s4 + $0x50] sm:$0xff] }
  0x11   :  { %v323_v60 = vld [vmem:[%s748_s4 + $0x78] sm:$0xff]  ;;  %v164_v0 = vld [vmem:[%s747_s0 + $0x40] sm:$0xff]  ;;  %v317_v3 = vld [vmem:[%s748_s4 + $0x48] sm:$0xff] }
  0x12   :  { %83 = vmatpush.msra.mxu0 %v66_v8  ;;  %421 = vmatpush.msra.mxu3 %v66_v8  ;;  %v319_v1 = vld [vmem:[%s748_s4 + $0x58] sm:$0xff]  ;;  %v316_v4 = vld [vmem:[%s748_s4 + $0x40] sm:$0xff]  ;;  %v165_v5 = vld [vmem:[%s747_s0 + $0x48] sm:$0xff] }
  0x13   :  { %328 = vmatpush.msra.mxu2 %v323_v60  ;;  %v315_v6 = vld [vmem:[%s748_s4 + $0x38] sm:$0xff]  ;;  %v314_v7 = vld [vmem:[%s748_s4 + $0x30] sm:$0xff]  ;;  %v313_v8 = vld [vmem:[%s748_s4 + $0x28] sm:$0xff] }
  0x14   :  { %84 = vmatpush.msra.mxu0 %v65_v9  ;;  %422 = vmatpush.msra.mxu3 %v65_v9  ;;  %v312_v9 = vld [vmem:[%s748_s4 + $0x20] sm:$0xff] }
  0x15   :  { %329 = vmatpush.msra.mxu2 %v322_v61 }
  0x16   :  { %85 = vmatpush.msra.mxu0 %v64_v10  ;;  %423 = vmatpush.msra.mxu3 %v64_v10  ;;  %v166_v10 = vld [vmem:[%s747_s0 + $0x50] sm:$0xff] }
  0x17   :  { %330 = vmatpush.msra.mxu2 %v321_v62 }
  0x18   :  { %86 = vmatpush.msra.mxu0 %v63_v11  ;;  %424 = vmatpush.msra.mxu3 %v63_v11  ;;  %v311_v11 = vld [vmem:[%s748_s4 + $0x18] sm:$0xff] }
  0x19   :  { %331 = vmatpush.msra.mxu2 %v320_v63 }
  0x1a   :  { %87 = vmatpush.msra.mxu0 %v62_v12  ;;  %425 = vmatpush.msra.mxu3 %v62_v12  ;;  %v310_v12 = vld [vmem:[%s748_s4 + $0x10] sm:$0xff] }
  0x1b   :  { %332 = vmatpush.msra.mxu2 %v319_v1 }
  0x1c   :  { %88 = vmatpush.msra.mxu0 %v61_v13  ;;  %426 = vmatpush.msra.mxu3 %v61_v13  ;;  %v167_v13 = vld [vmem:[%s747_s0 + $0x58] sm:$0xff] }
  0x1d   :  { %333 = vmatpush.msra.mxu2 %v318_v2 }
  0x1e   :  { %89 = vmatpush.msra.mxu0 %v60_v14  ;;  %427 = vmatpush.msra.mxu3 %v60_v14  ;;  %v309_v14 = vld [vmem:[%s748_s4 + $0x8] sm:$0xff] }
  0x1f   :  { %334 = vmatpush.msra.mxu2 %v317_v3 }
  0x20   :  { %90 = vmatpush.msra.mxu0 %v59_v15  ;;  %428 = vmatpush.msra.mxu3 %v59_v15  ;;  %v308_v15 = vld [vmem:[%s748_s4] sm:$0xff] }
  0x21   :  { %91 = vmatmul.f32.vlgmr.msra.gmra.mxu0 %v43_v16  ;;  %127 = vmatmul.f32.vlgmr.msra.gmra.mxu3 %v55_v17  ;;  %v461_v16 = vld [vmem:[%s746_s3] ss:$0 sm:$0xff] }
  0x22   :  { %335 = vmatpush.msra.mxu2 %v316_v4 }
  0x24   :  { %336 = vmatpush.msra.mxu2 %v315_v6 }
  0x26   :  { %337 = vmatpush.msra.mxu2 %v314_v7 }
  0x28   :  { %338 = vmatpush.msra.mxu2 %v313_v8 }
  0x29   :  { %94 = vmatmul.f32.gmra.mxu0 %v44_v18  ;;  %130 = vmatmul.f32.gmra.mxu3 %v56_v19 }
  0x2a   :  { %339 = vmatpush.msra.mxu2 %v312_v9 }
  0x2c   :  { %340 = vmatpush.msra.mxu2 %v311_v11 }
  0x2e   :  { %341 = vmatpush.msra.mxu2 %v310_v12 }
  0x30   :  { %342 = vmatpush.msra.mxu2 %v309_v14 }
  0x31   :  { %97 = vmatmul.f32.gmra.mxu0 %v45_v20  ;;  %133 = vmatmul.f32.gmra.mxu3 %v57_v21 }
  0x32   :  { %343 = vmatpush.msra.mxu2 %v308_v15 }
  0x39   :  { %100 = vmatmul.f32.gmra.mxu0 %v46_v22  ;;  %136 = vmatmul.f32.gmra.mxu3 %v58_v23 }
  0x41   :  { %103 = vmatmul.f32.gmra.mxu0 %v47_v24 }
  0x49   :  { %106 = vmatmul.f32.gmra.mxu0 %v48_v25 }
  0x51   :  { %109 = vmatmul.f32.gmra.mxu0 %v49_v26 }
  0x59   :  { %112 = vmatmul.f32.gmra.mxu0 %v50_v27 }
  0x61   :  { %115 = vmatmul.f32.gmra.mxu0 %v51_v28 }
  0x69   :  { %118 = vmatmul.f32.gmra.mxu0 %v52_v29 }
  0x71   :  { %121 = vmatmul.f32.gmra.mxu0 %v53_v30 }
  0x79   :  { %124 = vmatmul.f32.gmra.mxu0 %v54_v31 }
  0x9e   :  { %v92_v32 = vpop.f32.mrf.mxu0 }
  0xa4   :  { %v128_v33 = vpop.f32.mrf.mxu3 }
  0xa6   :  { %v95_v34 = vpop.f32.mrf.mxu0 }
  0xac   :  { %v131_v35 = vpop.f32.mrf.mxu3 }
  0xae   :  { %v98_v36 = vpop.f32.mrf.mxu0 }
  0xb4   :  { %v134_v37 = vpop.f32.mrf.mxu3 }
  0xb6   :  { %v101_v38 = vpop.f32.mrf.mxu0 }
  0xbc   :  { %v137_v39 = vpop.f32.mrf.mxu3 }
  0xbd   :  { %172 = vmatpush.msra.mxu1 %v137_v39  ;;  %429 = vmatpush.msrb.mxu3 %v137_v39 }
  0xbe   :  { %v104_v40 = vpop.f32.mrf.mxu0 }
  0xbf   :  { %173 = vmatpush.msra.mxu1 %v134_v37  ;;  %430 = vmatpush.msrb.mxu3 %v134_v37 }
  0xc1   :  { %174 = vmatpush.msra.mxu1 %v131_v35  ;;  %431 = vmatpush.msrb.mxu3 %v131_v35 }
  0xc3   :  { %175 = vmatpush.msra.mxu1 %v128_v33  ;;  %432 = vmatpush.msrb.mxu3 %v128_v33 }
  0xc6   :  { %v107_v41 = vpop.f32.mrf.mxu0 }
  0xce   :  { %v110_v42 = vpop.f32.mrf.mxu0 }
  0xd6   :  { %v113_v43 = vpop.f32.mrf.mxu0 }
  0xde   :  { %v116_v44 = vpop.f32.mrf.mxu0 }
  0xe6   :  { %v119_v45 = vpop.f32.mrf.mxu0 }
  0xee   :  { %v122_v46 = vpop.f32.mrf.mxu0 }
  0xf6   :  { %v125_v47 = vpop.f32.mrf.mxu0 }
  0xf7   :  { %176 = vmatpush.msra.mxu1 %v125_v47  ;;  %433 = vmatpush.msrb.mxu3 %v125_v47 }
  0xf9   :  { %177 = vmatpush.msra.mxu1 %v122_v46  ;;  %434 = vmatpush.msrb.mxu3 %v122_v46 }
  0xfb   :  { %178 = vmatpush.msra.mxu1 %v119_v45  ;;  %435 = vmatpush.msrb.mxu3 %v119_v45 }
  0xfd   :  { %179 = vmatpush.msra.mxu1 %v116_v44  ;;  %436 = vmatpush.msrb.mxu3 %v116_v44 }
  0xff   :  { %180 = vmatpush.msra.mxu1 %v113_v43  ;;  %437 = vmatpush.msrb.mxu3 %v113_v43 }
 0x101   :  { %181 = vmatpush.msra.mxu1 %v110_v42  ;;  %438 = vmatpush.msrb.mxu3 %v110_v42 }
 0x103   :  { %182 = vmatpush.msra.mxu1 %v107_v41  ;;  %439 = vmatpush.msrb.mxu3 %v107_v41 }
 0x105   :  { %183 = vmatpush.msra.mxu1 %v104_v40  ;;  %440 = vmatpush.msrb.mxu3 %v104_v40 }
 0x107   :  { %184 = vmatpush.msra.mxu1 %v101_v38  ;;  %441 = vmatpush.msrb.mxu3 %v101_v38 }
 0x109   :  { %185 = vmatpush.msra.mxu1 %v98_v36  ;;  %442 = vmatpush.msrb.mxu3 %v98_v36 }
 0x10b   :  { %186 = vmatpush.msra.mxu1 %v95_v34  ;;  %443 = vmatpush.msrb.mxu3 %v95_v34 }
 0x10d   :  { %187 = vmatpush.msra.mxu1 %v92_v32  ;;  %444 = vmatpush.msrb.mxu3 %v92_v32 }
 0x10e   :  { %188 = vmatmul.f32.vlgmr.msra.gmra.mxu1 %v156_v48  ;;  %224 = vmatmul.f32.vlgmr.msrb.gmra.mxu3 %v168_v52 }
 0x10f   :  { %445 = vmatpush.msra.mxu3 %v323_v60 }
 0x111   :  { %446 = vmatpush.msra.mxu3 %v322_v61 }
 0x113   :  { %447 = vmatpush.msra.mxu3 %v321_v62 }
 0x115   :  { %448 = vmatpush.msra.mxu3 %v320_v63 }
 0x116   :  { %191 = vmatmul.f32.gmra.mxu1 %v157_v49  ;;  %227 = vmatmul.f32.gmra.mxu3 %v169_v54  ;;  %v462_v49 = vld [vmem:[%s749_s5] ss:$0 sm:$0xff] }
 0x117   :  { %449 = vmatpush.msra.mxu3 %v319_v1 }
 0x119   :  { %450 = vmatpush.msra.mxu3 %v318_v2 }
 0x11b   :  { %451 = vmatpush.msra.mxu3 %v317_v3 }
 0x11d   :  { %452 = vmatpush.msra.mxu3 %v316_v4 }
 0x11e   :  { %194 = vmatmul.f32.gmra.mxu1 %v158_v50  ;;  %230 = vmatmul.f32.gmra.mxu3 %v170_v56 }
 0x11f   :  { %453 = vmatpush.msra.mxu3 %v315_v6 }
 0x121   :  { %454 = vmatpush.msra.mxu3 %v314_v7 }
 0x123   :  { %455 = vmatpush.msra.mxu3 %v313_v8 }
 0x125   :  { %456 = vmatpush.msra.mxu3 %v312_v9 }
 0x126   :  { %197 = vmatmul.f32.gmra.mxu1 %v159_v51  ;;  %233 = vmatmul.f32.gmra.mxu3 %v171_v58 }
 0x127   :  { %457 = vmatpush.msra.mxu3 %v311_v11 }
 0x129   :  { %458 = vmatpush.msra.mxu3 %v310_v12 }
 0x12b   :  { %459 = vmatpush.msra.mxu3 %v309_v14 }
 0x12d   :  { %460 = vmatpush.msra.mxu3 %v308_v15 }
 0x12e   :  { %200 = vmatmul.f32.gmra.mxu1 %v160_v53 }
 0x136   :  { %203 = vmatmul.f32.gmra.mxu1 %v161_v55 }
 0x13e   :  { %206 = vmatmul.f32.gmra.mxu1 %v162_v57 }
 0x146   :  { %209 = vmatmul.f32.gmra.mxu1 %v163_v59 }
 0x14e   :  { %212 = vmatmul.f32.gmra.mxu1 %v164_v0 }
 0x156   :  { %215 = vmatmul.f32.gmra.mxu1 %v165_v5 }
 0x15e   :  { %218 = vmatmul.f32.gmra.mxu1 %v166_v10 }
 0x166   :  { %221 = vmatmul.f32.gmra.mxu1 %v167_v13 }
 0x18b   :  { %v189_v17 = vpop.f32.mrf.mxu1 }
 0x18c   :  { %v292_v18 = vadd.f32 %v461_v16, %v189_v17 }
 0x18e   :  { %344 = vmatmul.f32.vlgmr.msra.gmra.mxu2 %v292_v18 }
 0x191   :  { %v225_v26 = vpop.f32.mrf.mxu3 }
 0x192   :  { %v304_v28 = vadd.f32 %v461_v16, %v225_v26 }
 0x193   :  { %v192_v19 = vpop.f32.mrf.mxu1 }
 0x194   :  { %v293_v20 = vadd.f32 %v461_v16, %v192_v19  ;;  %380 = vmatmul.f32.vlgmr.msra.gmra.mxu3 %v304_v28 }
 0x196   :  { %347 = vmatmul.f32.gmra.mxu2 %v293_v20 }
 0x199   :  { %v228_v30 = vpop.f32.mrf.mxu3 }
 0x19a   :  { %v305_v32 = vadd.f32 %v461_v16, %v228_v30 }
 0x19b   :  { %v195_v21 = vpop.f32.mrf.mxu1 }
 0x19c   :  { %v294_v22 = vadd.f32 %v461_v16, %v195_v21  ;;  %383 = vmatmul.f32.gmra.mxu3 %v305_v32 }
 0x19e   :  { %350 = vmatmul.f32.gmra.mxu2 %v294_v22 }
 0x1a1   :  { %v231_v34 = vpop.f32.mrf.mxu3 }
 0x1a2   :  { %v306_v36 = vadd.f32 %v461_v16, %v231_v34 }
 0x1a3   :  { %v198_v23 = vpop.f32.mrf.mxu1 }
 0x1a4   :  { %v295_v24 = vadd.f32 %v461_v16, %v198_v23  ;;  %386 = vmatmul.f32.gmra.mxu3 %v306_v36 }
 0x1a6   :  { %353 = vmatmul.f32.gmra.mxu2 %v295_v24 }
 0x1a9   :  { %v234_v38 = vpop.f32.mrf.mxu3 }
 0x1aa   :  { %v307_v40 = vadd.f32 %v461_v16, %v234_v38 }
 0x1ab   :  { %v201_v25 = vpop.f32.mrf.mxu1 }
 0x1ac   :  { %v296_v27 = vadd.f32 %v461_v16, %v201_v25  ;;  %389 = vmatmul.f32.gmra.mxu3 %v307_v40 }
 0x1ae   :  { %356 = vmatmul.f32.gmra.mxu2 %v296_v27 }
 0x1b3   :  { %v204_v29 = vpop.f32.mrf.mxu1 }
 0x1b4   :  { %v297_v31 = vadd.f32 %v461_v16, %v204_v29 }
 0x1b6   :  { %359 = vmatmul.f32.gmra.mxu2 %v297_v31 }
 0x1bb   :  { %v207_v33 = vpop.f32.mrf.mxu1 }
 0x1bc   :  { %v298_v35 = vadd.f32 %v461_v16, %v207_v33 }
 0x1be   :  { %362 = vmatmul.f32.gmra.mxu2 %v298_v35 }
 0x1c3   :  { %v210_v37 = vpop.f32.mrf.mxu1 }
 0x1c4   :  { %v299_v39 = vadd.f32 %v461_v16, %v210_v37 }
 0x1c6   :  { %365 = vmatmul.f32.gmra.mxu2 %v299_v39 }
 0x1cb   :  { %v213_v41 = vpop.f32.mrf.mxu1 }
 0x1cc   :  { %v300_v42 = vadd.f32 %v461_v16, %v213_v41 }
 0x1ce   :  { %368 = vmatmul.f32.gmra.mxu2 %v300_v42 }
 0x1d3   :  { %v216_v43 = vpop.f32.mrf.mxu1 }
 0x1d4   :  { %v301_v44 = vadd.f32 %v461_v16, %v216_v43 }
 0x1d6   :  { %371 = vmatmul.f32.gmra.mxu2 %v301_v44 }
 0x1db   :  { %v219_v45 = vpop.f32.mrf.mxu1 }
 0x1dc   :  { %v302_v46 = vadd.f32 %v461_v16, %v219_v45 }
 0x1de   :  { %374 = vmatmul.f32.gmra.mxu2 %v302_v46 }
 0x1e3   :  { %v222_v47 = vpop.f32.mrf.mxu1 }
 0x1e4   :  { %v303_v48 = vadd.f32 %v461_v16, %v222_v47 }
 0x1e6   :  { %377 = vmatmul.f32.gmra.mxu2 %v303_v48 }
 0x211   :  { %v345_v50 = vpop.f32.mrf.mxu2 }
 0x212   :  { %v346_v51 = vadd.f32 %v462_v49, %v345_v50 }
 0x214   :  { %393 = vst [vmem:[%s750_s6] sm:$0xff] %v346_v51 }
 0x217   :  { %v381_v59 = vpop.f32.mrf.mxu3 }
 0x218   :  { %v382_v61 = vadd.f32 %v462_v49, %v381_v59 }
 0x219   :  { %v348_v52 = vpop.f32.mrf.mxu2 }
 0x21a   :  { %v349_v53 = vadd.f32 %v462_v49, %v348_v52  ;;  %405 = vst [vmem:[%s750_s6 + $0x60] sm:$0xff] %v382_v61 }
 0x21c   :  { %394 = vst [vmem:[%s750_s6 + $0x8] sm:$0xff] %v349_v53 }
 0x21f   :  { %v384_v63 = vpop.f32.mrf.mxu3 }
 0x220   :  { %v385_v1 = vadd.f32 %v462_v49, %v384_v63 }
 0x221   :  { %v351_v54 = vpop.f32.mrf.mxu2 }
 0x222   :  { %v352_v55 = vadd.f32 %v462_v49, %v351_v54  ;;  %406 = vst [vmem:[%s750_s6 + $0x68] sm:$0xff] %v385_v1 }
 0x224   :  { %395 = vst [vmem:[%s750_s6 + $0x10] sm:$0xff] %v352_v55 }
 0x227   :  { %v387_v3 = vpop.f32.mrf.mxu3 }
 0x228   :  { %v388_v5 = vadd.f32 %v462_v49, %v387_v3 }
 0x229   :  { %v354_v56 = vpop.f32.mrf.mxu2 }
 0x22a   :  { %v355_v57 = vadd.f32 %v462_v49, %v354_v56  ;;  %407 = vst [vmem:[%s750_s6 + $0x70] sm:$0xff] %v388_v5 }
 0x22c   :  { %396 = vst [vmem:[%s750_s6 + $0x18] sm:$0xff] %v355_v57 }
 0x22f   :  { %v390_v7 = vpop.f32.mrf.mxu3 }
 0x230   :  { %v391_v9 = vadd.f32 %v462_v49, %v390_v7 }
 0x231   :  { %v357_v58 = vpop.f32.mrf.mxu2 }
 0x232   :  { %v358_v60 = vadd.f32 %v462_v49, %v357_v58  ;;  %408 = vst [vmem:[%s750_s6 + $0x78] sm:$0xff] %v391_v9 }
 0x234   :  { %397 = vst [vmem:[%s750_s6 + $0x20] sm:$0xff] %v358_v60 }
 0x239   :  { %v360_v62 = vpop.f32.mrf.mxu2 }
 0x23a   :  { %v361_v0 = vadd.f32 %v462_v49, %v360_v62 }
 0x23c   :  { %398 = vst [vmem:[%s750_s6 + $0x28] sm:$0xff] %v361_v0 }
 0x241   :  { %v363_v2 = vpop.f32.mrf.mxu2 }
 0x242   :  { %v364_v4 = vadd.f32 %v462_v49, %v363_v2 }
 0x244   :  { %399 = vst [vmem:[%s750_s6 + $0x30] sm:$0xff] %v364_v4 }
 0x249   :  { %v366_v6 = vpop.f32.mrf.mxu2 }
 0x24a   :  { %v367_v8 = vadd.f32 %v462_v49, %v366_v6 }
 0x24c   :  { %400 = vst [vmem:[%s750_s6 + $0x38] sm:$0xff] %v367_v8 }
 0x251   :  { %v369_v10 = vpop.f32.mrf.mxu2 }
 0x252   :  { %v370_v11 = vadd.f32 %v462_v49, %v369_v10 }
 0x254   :  { %401 = vst [vmem:[%s750_s6 + $0x40] sm:$0xff] %v370_v11 }
 0x259   :  { %v372_v12 = vpop.f32.mrf.mxu2 }
 0x25a   :  { %v373_v13 = vadd.f32 %v462_v49, %v372_v12 }
 0x25c   :  { %402 = vst [vmem:[%s750_s6 + $0x48] sm:$0xff] %v373_v13 }
 0x261   :  { %v375_v14 = vpop.f32.mrf.mxu2 }
 0x262   :  { %v376_v15 = vadd.f32 %v462_v49, %v375_v14 }
 0x264   :  { %403 = vst [vmem:[%s750_s6 + $0x50] sm:$0xff] %v376_v15 }
 0x269   :  { %v378_v16 = vpop.f32.mrf.mxu2 }
 0x26a   :  { %v379_v17 = vadd.f32 %v462_v49, %v378_v16 }
 0x26c   :  { %404 = vst [vmem:[%s750_s6 + $0x58] sm:$0xff] %v379_v17 }

// kernel: gcn_forward.2
= control target key start
LH: loop header
LB: loop body
LE: loop exit
PB: predicated region body
PF: predicated region fallthrough
CT: control target
= control target key end

     0   :  { %s609_s2 = inlined_call_operand.vmem [shape: f32[128,128], index: 2, kind: input, shape index: {}]   ;;  %s610_s1 = inlined_call_operand.vmem [shape: f32[128,128], index: 1, kind: input, shape index: {}]   ;;  %s611_s3 = inlined_call_operand.vmem [shape: f32[1,128], index: 3, kind: input, shape index: {}]   ;;  %s612_s0 = inlined_call_operand.vmem [shape: f32[128,128], index: 0, kind: input, shape index: {}]   ;;  %s613_s4 = inlined_call_operand.vmem [shape: f32[128,128], index: 4, kind: output, shape index: {}]  }
   0x1   :  { %v68_v0 = vld [vmem:[%s609_s2 + $0x78] sm:$0xff]  ;;  %v67_v1 = vld [vmem:[%s609_s2 + $0x70] sm:$0xff]  ;;  %v66_v2 = vld [vmem:[%s609_s2 + $0x68] sm:$0xff] }
   0x2   :  { %338 = vmatpush.msra.mxu2 %v68_v0  ;;  %69 = vmatpush.msra.mxu0 %v68_v0  ;;  %v65_v3 = vld [vmem:[%s609_s2 + $0x60] sm:$0xff]  ;;  %v64_v4 = vld [vmem:[%s609_s2 + $0x58] sm:$0xff]  ;;  %v63_v5 = vld [vmem:[%s609_s2 + $0x50] sm:$0xff] }
   0x3   :  { %v62_v6 = vld [vmem:[%s609_s2 + $0x48] sm:$0xff]  ;;  %v61_v7 = vld [vmem:[%s609_s2 + $0x40] sm:$0xff]  ;;  %v60_v8 = vld [vmem:[%s609_s2 + $0x38] sm:$0xff] }
   0x4   :  { %339 = vmatpush.msra.mxu2 %v67_v1  ;;  %70 = vmatpush.msra.mxu0 %v67_v1  ;;  %v59_v9 = vld [vmem:[%s609_s2 + $0x30] sm:$0xff]  ;;  %v58_v10 = vld [vmem:[%s609_s2 + $0x28] sm:$0xff]  ;;  %v57_v11 = vld [vmem:[%s609_s2 + $0x20] sm:$0xff] }
   0x5   :  { %v56_v12 = vld [vmem:[%s609_s2 + $0x18] sm:$0xff]  ;;  %v55_v13 = vld [vmem:[%s609_s2 + $0x10] sm:$0xff]  ;;  %v54_v14 = vld [vmem:[%s609_s2 + $0x8] sm:$0xff] }
   0x6   :  { %340 = vmatpush.msra.mxu2 %v66_v2  ;;  %71 = vmatpush.msra.mxu0 %v66_v2  ;;  %v53_v15 = vld [vmem:[%s609_s2] sm:$0xff]  ;;  %v46_v18 = vld [vmem:[%s610_s1 + $0x48] sm:$0xff]  ;;  %v47_v20 = vld [vmem:[%s610_s1 + $0x50] sm:$0xff] }
   0x7   :  { %v45_v16 = vld [vmem:[%s610_s1 + $0x40] sm:$0xff]  ;;  %v38_v19 = vld [vmem:[%s610_s1 + $0x8] sm:$0xff]  ;;  %v39_v21 = vld [vmem:[%s610_s1 + $0x10] sm:$0xff] }
   0x8   :  { %341 = vmatpush.msra.mxu2 %v65_v3  ;;  %72 = vmatpush.msra.mxu0 %v65_v3  ;;  %v37_v17 = vld [vmem:[%s610_s1] sm:$0xff]  ;;  %v48_v22 = vld [vmem:[%s610_s1 + $0x58] sm:$0xff]  ;;  %v50_v26 = vld [vmem:[%s610_s1 + $0x68] sm:$0xff] }
   0x9   :  { %v40_v23 = vld [vmem:[%s610_s1 + $0x18] sm:$0xff]  ;;  %v49_v24 = vld [vmem:[%s610_s1 + $0x60] sm:$0xff]  ;;  %v42_v27 = vld [vmem:[%s610_s1 + $0x28] sm:$0xff] }
   0xa   :  { %342 = vmatpush.msra.mxu2 %v64_v4  ;;  %73 = vmatpush.msra.mxu0 %v64_v4  ;;  %v41_v25 = vld [vmem:[%s610_s1 + $0x20] sm:$0xff]  ;;  %v51_v28 = vld [vmem:[%s610_s1 + $0x70] sm:$0xff]  ;;  %v52_v30 = vld [vmem:[%s610_s1 + $0x78] sm:$0xff] }
   0xb   :  { %v43_v29 = vld [vmem:[%s610_s1 + $0x30] sm:$0xff]  ;;  %v44_v31 = vld [vmem:[%s610_s1 + $0x38] sm:$0xff]  ;;  %v158_v48 = vld [vmem:[%s612_s0 + $0x40] sm:$0xff] }
   0xc   :  { %343 = vmatpush.msra.mxu2 %v63_v5  ;;  %74 = vmatpush.msra.mxu0 %v63_v5  ;;  %v150_v49 = vld [vmem:[%s612_s0] sm:$0xff]  ;;  %v159_v50 = vld [vmem:[%s612_s0 + $0x48] sm:$0xff]  ;;  %v160_v52 = vld [vmem:[%s612_s0 + $0x50] sm:$0xff] }
   0xd   :  { %v151_v51 = vld [vmem:[%s612_s0 + $0x8] sm:$0xff]  ;;  %v152_v53 = vld [vmem:[%s612_s0 + $0x10] sm:$0xff]  ;;  %v161_v54 = vld [vmem:[%s612_s0 + $0x58] sm:$0xff] }
   0xe   :  { %344 = vmatpush.msra.mxu2 %v62_v6  ;;  %75 = vmatpush.msra.mxu0 %v62_v6  ;;  %v153_v55 = vld [vmem:[%s612_s0 + $0x18] sm:$0xff]  ;;  %v162_v56 = vld [vmem:[%s612_s0 + $0x60] sm:$0xff]  ;;  %v163_v58 = vld [vmem:[%s612_s0 + $0x68] sm:$0xff] }
   0xf   :  { %v154_v57 = vld [vmem:[%s612_s0 + $0x20] sm:$0xff]  ;;  %v155_v59 = vld [vmem:[%s612_s0 + $0x28] sm:$0xff]  ;;  %v164_v60 = vld [vmem:[%s612_s0 + $0x70] sm:$0xff] }
  0x10   :  { %345 = vmatpush.msra.mxu2 %v61_v7  ;;  %76 = vmatpush.msra.mxu0 %v61_v7  ;;  %v156_v61 = vld [vmem:[%s612_s0 + $0x30] sm:$0xff]  ;;  %v165_v62 = vld [vmem:[%s612_s0 + $0x78] sm:$0xff]  ;;  %v543_v0 = vld [vmem:[%s611_s3] ss:$0 sm:$0xff] }
  0x11   :  { %v157_v63 = vld [vmem:[%s612_s0 + $0x38] sm:$0xff] }
  0x12   :  { %346 = vmatpush.msra.mxu2 %v60_v8  ;;  %77 = vmatpush.msra.mxu0 %v60_v8 }
  0x14   :  { %347 = vmatpush.msra.mxu2 %v59_v9  ;;  %78 = vmatpush.msra.mxu0 %v59_v9 }
  0x16   :  { %348 = vmatpush.msra.mxu2 %v58_v10  ;;  %79 = vmatpush.msra.mxu0 %v58_v10 }
  0x18   :  { %349 = vmatpush.msra.mxu2 %v57_v11  ;;  %80 = vmatpush.msra.mxu0 %v57_v11 }
  0x1a   :  { %350 = vmatpush.msra.mxu2 %v56_v12  ;;  %81 = vmatpush.msra.mxu0 %v56_v12 }
  0x1c   :  { %351 = vmatpush.msra.mxu2 %v55_v13  ;;  %82 = vmatpush.msra.mxu0 %v55_v13 }
  0x1e   :  { %352 = vmatpush.msra.mxu2 %v54_v14  ;;  %83 = vmatpush.msra.mxu0 %v54_v14 }
  0x20   :  { %353 = vmatpush.msra.mxu2 %v53_v15  ;;  %84 = vmatpush.msra.mxu0 %v53_v15 }
  0x21   :  { %109 = vmatmul.f32.vlgmr.msra.gmra.mxu2 %v45_v16  ;;  %85 = vmatmul.f32.vlgmr.msra.gmra.mxu0 %v37_v17 }
  0x29   :  { %112 = vmatmul.f32.gmra.mxu2 %v46_v18  ;;  %88 = vmatmul.f32.gmra.mxu0 %v38_v19 }
  0x31   :  { %115 = vmatmul.f32.gmra.mxu2 %v47_v20  ;;  %91 = vmatmul.f32.gmra.mxu0 %v39_v21 }
  0x39   :  { %118 = vmatmul.f32.gmra.mxu2 %v48_v22  ;;  %94 = vmatmul.f32.gmra.mxu0 %v40_v23 }
  0x41   :  { %121 = vmatmul.f32.gmra.mxu2 %v49_v24  ;;  %97 = vmatmul.f32.gmra.mxu0 %v41_v25 }
  0x49   :  { %124 = vmatmul.f32.gmra.mxu2 %v50_v26  ;;  %100 = vmatmul.f32.gmra.mxu0 %v42_v27 }
  0x51   :  { %127 = vmatmul.f32.gmra.mxu2 %v51_v28  ;;  %103 = vmatmul.f32.gmra.mxu0 %v43_v29 }
  0x59   :  { %130 = vmatmul.f32.gmra.mxu2 %v52_v30  ;;  %106 = vmatmul.f32.gmra.mxu0 %v44_v31 }
  0x9e   :  { %v86_v33 = vpop.f32.mrf.mxu0 }
  0xa4   :  { %v110_v32 = vpop.f32.mrf.mxu2 }
  0xa6   :  { %v89_v35 = vpop.f32.mrf.mxu0 }
  0xac   :  { %v113_v34 = vpop.f32.mrf.mxu2 }
  0xae   :  { %v92_v37 = vpop.f32.mrf.mxu0 }
  0xb4   :  { %v116_v36 = vpop.f32.mrf.mxu2 }
  0xb6   :  { %v95_v39 = vpop.f32.mrf.mxu0 }
  0xbc   :  { %v119_v38 = vpop.f32.mrf.mxu2 }
  0xbe   :  { %v98_v42 = vpop.f32.mrf.mxu0 }
  0xc4   :  { %v122_v40 = vpop.f32.mrf.mxu2 }
  0xc6   :  { %v101_v44 = vpop.f32.mrf.mxu0 }
  0xcc   :  { %v125_v41 = vpop.f32.mrf.mxu2 }
  0xce   :  { %v104_v46 = vpop.f32.mrf.mxu0 }
  0xd4   :  { %v128_v43 = vpop.f32.mrf.mxu2 }
  0xd6   :  { %v107_v47 = vpop.f32.mrf.mxu0 }
  0xdc   :  { %v131_v45 = vpop.f32.mrf.mxu2 }
  0xdd   :  { %166 = vmatpush.msra.mxu1 %v131_v45  ;;  %354 = vmatpush.msra.mxu3 %v131_v45 }
  0xdf   :  { %167 = vmatpush.msra.mxu1 %v128_v43  ;;  %355 = vmatpush.msra.mxu3 %v128_v43 }
  0xe1   :  { %168 = vmatpush.msra.mxu1 %v125_v41  ;;  %356 = vmatpush.msra.mxu3 %v125_v41 }
  0xe3   :  { %169 = vmatpush.msra.mxu1 %v122_v40  ;;  %357 = vmatpush.msra.mxu3 %v122_v40 }
  0xe5   :  { %170 = vmatpush.msra.mxu1 %v119_v38  ;;  %358 = vmatpush.msra.mxu3 %v119_v38 }
  0xe7   :  { %171 = vmatpush.msra.mxu1 %v116_v36  ;;  %359 = vmatpush.msra.mxu3 %v116_v36 }
  0xe9   :  { %172 = vmatpush.msra.mxu1 %v113_v34  ;;  %360 = vmatpush.msra.mxu3 %v113_v34 }
  0xeb   :  { %173 = vmatpush.msra.mxu1 %v110_v32  ;;  %361 = vmatpush.msra.mxu3 %v110_v32 }
  0xed   :  { %174 = vmatpush.msra.mxu1 %v107_v47  ;;  %362 = vmatpush.msra.mxu3 %v107_v47 }
  0xef   :  { %175 = vmatpush.msra.mxu1 %v104_v46  ;;  %363 = vmatpush.msra.mxu3 %v104_v46 }
  0xf1   :  { %176 = vmatpush.msra.mxu1 %v101_v44  ;;  %364 = vmatpush.msra.mxu3 %v101_v44 }
  0xf3   :  { %177 = vmatpush.msra.mxu1 %v98_v42  ;;  %365 = vmatpush.msra.mxu3 %v98_v42 }
  0xf5   :  { %178 = vmatpush.msra.mxu1 %v95_v39  ;;  %366 = vmatpush.msra.mxu3 %v95_v39 }
  0xf7   :  { %179 = vmatpush.msra.mxu1 %v92_v37  ;;  %367 = vmatpush.msra.mxu3 %v92_v37 }
  0xf9   :  { %180 = vmatpush.msra.mxu1 %v89_v35  ;;  %368 = vmatpush.msra.mxu3 %v89_v35 }
  0xfb   :  { %181 = vmatpush.msra.mxu1 %v86_v33  ;;  %369 = vmatpush.msra.mxu3 %v86_v33 }
  0xfc   :  { %206 = vmatmul.f32.vlgmr.msra.gmra.mxu3 %v158_v48  ;;  %182 = vmatmul.f32.vlgmr.msra.gmra.mxu1 %v150_v49 }
 0x104   :  { %209 = vmatmul.f32.gmra.mxu3 %v159_v50  ;;  %185 = vmatmul.f32.gmra.mxu1 %v151_v51 }
 0x10c   :  { %212 = vmatmul.f32.gmra.mxu3 %v160_v52  ;;  %188 = vmatmul.f32.gmra.mxu1 %v152_v53 }
 0x114   :  { %215 = vmatmul.f32.gmra.mxu3 %v161_v54  ;;  %191 = vmatmul.f32.gmra.mxu1 %v153_v55 }
 0x11c   :  { %218 = vmatmul.f32.gmra.mxu3 %v162_v56  ;;  %194 = vmatmul.f32.gmra.mxu1 %v154_v57 }
 0x124   :  { %221 = vmatmul.f32.gmra.mxu3 %v163_v58  ;;  %197 = vmatmul.f32.gmra.mxu1 %v155_v59 }
 0x12c   :  { %224 = vmatmul.f32.gmra.mxu3 %v164_v60  ;;  %200 = vmatmul.f32.gmra.mxu1 %v156_v61 }
 0x134   :  { %227 = vmatmul.f32.gmra.mxu3 %v165_v62  ;;  %203 = vmatmul.f32.gmra.mxu1 %v157_v63 }
 0x179   :  { %v183_v1 = vpop.f32.mrf.mxu1 }
 0x17a   :  { %v286_v2 = vadd.f32 %v543_v0, %v183_v1 }
 0x17c   :  { %v302_v3 = vmax.f32 %v286_v2, 0.0 }
 0x17e   :  { %318 = vst [vmem:[%s613_s4] sm:$0xff] %v302_v3 }
 0x17f   :  { %v207_v4 = vpop.f32.mrf.mxu3 }
 0x180   :  { %v294_v5 = vadd.f32 %v543_v0, %v207_v4 }
 0x181   :  { %v186_v6 = vpop.f32.mrf.mxu1 }
 0x182   :  { %v310_v7 = vmax.f32 %v294_v5, 0.0  ;;  %v287_v8 = vadd.f32 %v543_v0, %v186_v6 }
 0x184   :  { %326 = vst [vmem:[%s613_s4 + $0x40] sm:$0xff] %v310_v7  ;;  %v303_v9 = vmax.f32 %v287_v8, 0.0 }
 0x186   :  { %319 = vst [vmem:[%s613_s4 + $0x8] sm:$0xff] %v303_v9 }
 0x187   :  { %v210_v10 = vpop.f32.mrf.mxu3 }
 0x188   :  { %v295_v11 = vadd.f32 %v543_v0, %v210_v10 }
 0x189   :  { %v189_v12 = vpop.f32.mrf.mxu1 }
 0x18a   :  { %v311_v13 = vmax.f32 %v295_v11, 0.0  ;;  %v288_v14 = vadd.f32 %v543_v0, %v189_v12 }
 0x18c   :  { %327 = vst [vmem:[%s613_s4 + $0x48] sm:$0xff] %v311_v13  ;;  %v304_v15 = vmax.f32 %v288_v14, 0.0 }
 0x18e   :  { %320 = vst [vmem:[%s613_s4 + $0x10] sm:$0xff] %v304_v15 }
 0x18f   :  { %v213_v16 = vpop.f32.mrf.mxu3 }
 0x190   :  { %v296_v17 = vadd.f32 %v543_v0, %v213_v16 }
 0x191   :  { %v192_v18 = vpop.f32.mrf.mxu1 }
 0x192   :  { %v312_v19 = vmax.f32 %v296_v17, 0.0  ;;  %v289_v20 = vadd.f32 %v543_v0, %v192_v18 }
 0x194   :  { %328 = vst [vmem:[%s613_s4 + $0x50] sm:$0xff] %v312_v19  ;;  %v305_v21 = vmax.f32 %v289_v20, 0.0 }
 0x196   :  { %321 = vst [vmem:[%s613_s4 + $0x18] sm:$0xff] %v305_v21 }
 0x197   :  { %v216_v22 = vpop.f32.mrf.mxu3 }
 0x198   :  { %v297_v23 = vadd.f32 %v543_v0, %v216_v22 }
 0x199   :  { %v195_v24 = vpop.f32.mrf.mxu1 }
 0x19a   :  { %v313_v25 = vmax.f32 %v297_v23, 0.0  ;;  %v290_v26 = vadd.f32 %v543_v0, %v195_v24 }
 0x19c   :  { %329 = vst [vmem:[%s613_s4 + $0x58] sm:$0xff] %v313_v25  ;;  %v306_v27 = vmax.f32 %v290_v26, 0.0 }
 0x19e   :  { %322 = vst [vmem:[%s613_s4 + $0x20] sm:$0xff] %v306_v27 }
 0x19f   :  { %v219_v28 = vpop.f32.mrf.mxu3 }
 0x1a0   :  { %v298_v29 = vadd.f32 %v543_v0, %v219_v28 }
 0x1a1   :  { %v198_v30 = vpop.f32.mrf.mxu1 }
 0x1a2   :  { %v314_v31 = vmax.f32 %v298_v29, 0.0  ;;  %v291_v32 = vadd.f32 %v543_v0, %v198_v30 }
 0x1a4   :  { %330 = vst [vmem:[%s613_s4 + $0x60] sm:$0xff] %v314_v31  ;;  %v307_v33 = vmax.f32 %v291_v32, 0.0 }
 0x1a6   :  { %323 = vst [vmem:[%s613_s4 + $0x28] sm:$0xff] %v307_v33 }
 0x1a7   :  { %v222_v34 = vpop.f32.mrf.mxu3 }
 0x1a8   :  { %v299_v35 = vadd.f32 %v543_v0, %v222_v34 }
 0x1a9   :  { %v201_v36 = vpop.f32.mrf.mxu1 }
 0x1aa   :  { %v315_v37 = vmax.f32 %v299_v35, 0.0  ;;  %v292_v38 = vadd.f32 %v543_v0, %v201_v36 }
 0x1ac   :  { %331 = vst [vmem:[%s613_s4 + $0x68] sm:$0xff] %v315_v37  ;;  %v308_v39 = vmax.f32 %v292_v38, 0.0 }
 0x1ae   :  { %324 = vst [vmem:[%s613_s4 + $0x30] sm:$0xff] %v308_v39 }
 0x1af   :  { %v225_v40 = vpop.f32.mrf.mxu3 }
 0x1b0   :  { %v300_v41 = vadd.f32 %v543_v0, %v225_v40 }
 0x1b1   :  { %v204_v42 = vpop.f32.mrf.mxu1 }
 0x1b2   :  { %v316_v43 = vmax.f32 %v300_v41, 0.0  ;;  %v293_v44 = vadd.f32 %v543_v0, %v204_v42 }
 0x1b4   :  { %332 = vst [vmem:[%s613_s4 + $0x70] sm:$0xff] %v316_v43  ;;  %v309_v45 = vmax.f32 %v293_v44, 0.0 }
 0x1b6   :  { %325 = vst [vmem:[%s613_s4 + $0x38] sm:$0xff] %v309_v45 }
 0x1b7   :  { %v228_v46 = vpop.f32.mrf.mxu3 }
 0x1b8   :  { %v301_v47 = vadd.f32 %v543_v0, %v228_v46 }
 0x1ba   :  { %v317_v48 = vmax.f32 %v301_v47, 0.0 }
 0x1bc   :  { %333 = vst [vmem:[%s613_s4 + $0x78] sm:$0xff] %v317_v48 }

</bundles_post_ra>
